<compile_context>
chip_gen: v6e
topology: v6e:2x2x1
jax: 0.10.0
libtpu: 0.0.40
codegen_flags: <defaults>
</compile_context>

<pallas_src>
import functools

import jax
import jax.numpy as jnp
from jax import lax
from jax.experimental import pallas as pl
from jax.experimental.pallas import tpu as pltpu


def _round_up(x, m):
    return ((x + m - 1) // m) * m


def _logits_kernel(x_ref, wvu_ref, bvu_ref, ww_ref, out_ref, *, D):
    # x_ref:   (TILE_N, L)   native dtype
    # wvu_ref: (L, 2D)       native dtype (Wv | Wu fused)
    # bvu_ref: (1, 2D)       f32          (bv | bu fused)
    # ww_ref:  (K, D)        f32          (PyTorch layout: out x in)
    # out_ref: (K, TILE_N)   f32 logits (lane-dense on N)
    h = jnp.dot(x_ref[...], wvu_ref[...],
                preferred_element_type=jnp.float32) + bvu_ref[...]
    av = jnp.tanh(h[:, :D])
    au = jax.nn.sigmoid(h[:, D:])
    gated = av * au                                        # (TILE_N, D) f32

    # (K, D) contracted with (TILE_N, D) on D -> (K, TILE_N): produces the
    # transposed logits directly, so the store is an unmasked lane-dense vst.
    out_ref[...] = lax.dot_general(
        ww_ref[...], gated,
        dimension_numbers=(((1,), (1,)), ((), ())),
        preferred_element_type=jnp.float32)


def _softmax_kernel(logits_ref, out_ref, *, n_valid):
    a = logits_ref[...]                                    # (K, N_pad) f32
    col = lax.broadcasted_iota(jnp.int32, a.shape, 1)
    a = jnp.where(col < n_valid, a, -jnp.inf)              # mask padded columns
    m = jnp.max(a, axis=1, keepdims=True)
    e = jnp.exp(a - m)
    s = jnp.sum(e, axis=1, keepdims=True)
    out_ref[...] = (e / s).astype(out_ref.dtype)


def attention_gated(x, wv, bv, wu, bu, ww, bw, is_norm=True, tile_n_max=2048):
    """x: (N, L); wv/wu: (L, D); bv/bu: (D,); ww: (K, D) PyTorch layout; bw: (K,).

    Returns (K, N): softmax over N when is_norm=True, raw logits (+bw) otherwise.
    """
    N, L = x.shape
    D = wv.shape[1]
    K = ww.shape[0]

    # Fuse Wv|Wu so the MXU makes one pass over each x tile (2D=256-wide output
    # matches the 2x256 MXU on v6e/v7x).
    wvu = jnp.concatenate([wv, wu], axis=1).astype(x.dtype)          # (L, 2D)
    bvu = jnp.concatenate([bv, bu], axis=0).reshape(1, 2 * D).astype(jnp.float32)
    ww_f32 = ww.astype(jnp.float32)                                  # (K, D)

    # Adaptive tiling: pad N to a sublane-friendly multiple of 128, then choose
    # the smallest per-tile size (<= tile_n_max) that covers it so padding
    # waste stays below 128 rows per tile.
    n128 = _round_up(max(N, 1), 128)
    num_tiles = int(pl.cdiv(n128, tile_n_max))
    tile_n = _round_up(-(-n128 // num_tiles), 128)
    n_pad = num_tiles * tile_n
    if n_pad != N:
        x = jnp.pad(x, ((0, n_pad - N), (0, 0)))

    itemsize = jnp.dtype(x.dtype).itemsize
    cost = pl.CostEstimate(
        flops=2 * n_pad * L * 2 * D + 2 * n_pad * D * K,
        transcendentals=2 * n_pad * D,
        bytes_accessed=(n_pad * L * itemsize + wvu.size * itemsize
                        + bvu.size * 4 + ww_f32.size * 4 + K * n_pad * 4),
    )

    logits = pl.pallas_call(
        functools.partial(_logits_kernel, D=D),
        out_shape=jax.ShapeDtypeStruct((K, n_pad), jnp.float32),
        grid=(num_tiles,),
        in_specs=[
            pl.BlockSpec((tile_n, L), lambda i: (i, 0)),     # x tiles stream
            pl.BlockSpec((L, 2 * D), lambda i: (0, 0)),      # fused weights resident
            pl.BlockSpec((1, 2 * D), lambda i: (0, 0)),      # fused bias resident
            pl.BlockSpec((K, D), lambda i: (0, 0)),          # attn weights resident
        ],
        out_specs=pl.BlockSpec((K, tile_n), lambda i: (0, i)),
        compiler_params=pltpu.CompilerParams(
            dimension_semantics=("parallel",),
            vmem_limit_bytes=48 * 1024 * 1024,
        ),
        cost_estimate=cost,
    )(x, wvu, bvu, ww_f32)

    if not is_norm:
        # bw only matters when the softmax is skipped (it cancels otherwise).
        return logits[:, :N] + bw.reshape(K, 1).astype(jnp.float32)

    # bw is constant along the softmax axis (N) and cancels exactly -> omitted.
    out = pl.pallas_call(
        functools.partial(_softmax_kernel, n_valid=N),
        out_shape=jax.ShapeDtypeStruct((K, n_pad), jnp.float32),
        in_specs=[pl.BlockSpec((K, n_pad), lambda: (0, 0))],
        out_specs=pl.BlockSpec((K, n_pad), lambda: (0, 0)),
    )(logits)
    return out[:, :N]


def _reference(x, wv, bv, wu, bu, ww, bw, is_norm=True):
    av = jnp.tanh(x @ wv + bv)
    au = jax.nn.sigmoid(x @ wu + bu)
    a = ((av * au) @ ww.T + bw).T        # (K, N), ww in PyTorch (K, D) layout
    if is_norm:
        a = jax.nn.softmax(a, axis=1)
    return a


if __name__ == "__main__":
    # Module defaults: L=512, D=128, K=1.  Test a tiny bag (N=8), a bag whose
    # size is not a tile multiple (N=300), and a multi-tile bag (N=2500) to
    # exercise the adaptive tiling + padding/masking paths.
    L, D, K = 512, 128, 1

    key = jax.random.PRNGKey(0)
    kwv, kbv, kwu, kbu, kww, kbw, kx1, kx2, kx3 = jax.random.split(key, 9)

    lim_l = 1.0 / jnp.sqrt(L)
    lim_d = 1.0 / jnp.sqrt(D)
    wv = jax.random.uniform(kwv, (L, D), minval=-lim_l, maxval=lim_l, dtype=jnp.float32)
    bv = jax.random.uniform(kbv, (D,), minval=-lim_l, maxval=lim_l, dtype=jnp.float32)
    wu = jax.random.uniform(kwu, (L, D), minval=-lim_l, maxval=lim_l, dtype=jnp.float32)
    bu = jax.random.uniform(kbu, (D,), minval=-lim_l, maxval=lim_l, dtype=jnp.float32)
    ww = jax.random.uniform(kww, (K, D), minval=-lim_d, maxval=lim_d, dtype=jnp.float32)
    bw = jax.random.uniform(kbw, (K,), minval=-lim_d, maxval=lim_d, dtype=jnp.float32)

    for N, kx in ((8, kx1), (300, kx2), (2500, kx3)):
        x = jax.random.normal(kx, (N, L), dtype=jnp.float32)

        out = attention_gated(x, wv, bv, wu, bu, ww, bw, is_norm=True)
        out = jax.block_until_ready(out)
        ref = _reference(x, wv, bv, wu, bu, ww, bw, is_norm=True)
        assert out.shape == (K, N), out.shape
        assert jnp.allclose(out, ref, atol=2e-5, rtol=1e-4), (
            "norm", N, float(jnp.max(jnp.abs(out - ref))))

        raw = attention_gated(x, wv, bv, wu, bu, ww, bw, is_norm=False)
        raw = jax.block_until_ready(raw)
        raw_ref = _reference(x, wv, bv, wu, bu, ww, bw, is_norm=False)
        assert raw.shape == (K, N), raw.shape
        assert jnp.allclose(raw, raw_ref, atol=2e-5, rtol=1e-4), (
            "raw", N, float(jnp.max(jnp.abs(raw - raw_ref))))

    print("KERNEL_OK")
</pallas_src>

<mosaic_0001>
module attributes {stable_mosaic.version = 11 : i64} {
  func.func @_logits_kernel(%arg0: i32, %arg1: memref<128x512xf32, #tpu.memory_space<vmem>>, %arg2: memref<512x256xf32, #tpu.memory_space<vmem>>, %arg3: memref<1x256xf32, #tpu.memory_space<vmem>>, %arg4: memref<1x128xf32, #tpu.memory_space<vmem>>, %arg5: memref<1x128xf32, #tpu.memory_space<vmem>>) attributes {dimension_semantics = [#tpu.dimension_semantics<parallel>], iteration_bounds = array<i64: 1>, scalar_prefetch = 0 : i64, scratch_operands = 0 : i64, tpu.core_type = #tpu.core_type<tc>, window_params = [{transform_indices = @transform_0, window_bounds = array<i64: 128, 512>}, {pipeline_mode = #tpu.pipeline_mode<synchronous>, transform_indices = @transform_1, window_bounds = array<i64: 512, 256>}, {pipeline_mode = #tpu.pipeline_mode<synchronous>, transform_indices = @transform_2, window_bounds = array<i64: 1, 256>}, {pipeline_mode = #tpu.pipeline_mode<synchronous>, transform_indices = @transform_3, window_bounds = array<i64: 1, 128>}, {transform_indices = @transform_4, window_bounds = array<i64: 1, 128>}]} {
    %c0 = arith.constant 0 : index
    %c0_0 = arith.constant 0 : index
    %0 = vector.load %arg1[%c0, %c0_0] : memref<128x512xf32, #tpu.memory_space<vmem>>, vector<128x512xf32>
    %c0_1 = arith.constant 0 : index
    %c0_2 = arith.constant 0 : index
    %1 = vector.load %arg2[%c0_1, %c0_2] : memref<512x256xf32, #tpu.memory_space<vmem>>, vector<512x256xf32>
    %cst = arith.constant dense<0.000000e+00> : vector<128x256xf32>
    %2 = tpu.matmul %0, %1, %cst {dimension_numbers = #tpu.dot_dimension_numbers<[1], [0], [0], [1], [0, 0, 1, 1], [], []>} : vector<128x512xf32>, vector<512x256xf32>, vector<128x256xf32> -> vector<128x256xf32>
    %c0_3 = arith.constant 0 : index
    %c0_4 = arith.constant 0 : index
    %3 = vector.load %arg3[%c0_3, %c0_4] : memref<1x256xf32, #tpu.memory_space<vmem>>, vector<1x256xf32>
    %4 = vector.broadcast %3 : vector<1x256xf32> to vector<128x256xf32>
    %5 = arith.addf %2, %4 : vector<128x256xf32>
    %6 = vector.extract_strided_slice %5 {offsets = [0, 0], sizes = [128, 128], strides = [1, 1]} : vector<128x256xf32> to vector<128x128xf32>
    %7 = math.tanh %6 : vector<128x128xf32>
    %8 = vector.extract_strided_slice %5 {offsets = [0, 128], sizes = [128, 128], strides = [1, 1]} : vector<128x256xf32> to vector<128x128xf32>
    %9 = arith.negf %8 : vector<128x128xf32>
    %10 = math.exp %9 : vector<128x128xf32>
    %cst_5 = arith.constant 1.000000e+00 : f32
    %11 = vector.broadcast %cst_5 : f32 to vector<128x128xf32>
    %12 = arith.addf %11, %10 : vector<128x128xf32>
    %13 = arith.divf %11, %12 : vector<128x128xf32>
    %14 = arith.mulf %7, %13 : vector<128x128xf32>
    %c0_6 = arith.constant 0 : index
    %c0_7 = arith.constant 0 : index
    %15 = vector.load %arg4[%c0_6, %c0_7] : memref<1x128xf32, #tpu.memory_space<vmem>>, vector<1x128xf32>
    %cst_8 = arith.constant dense<0.000000e+00> : vector<1x128xf32>
    %16 = tpu.matmul %15, %14, %cst_8 {dimension_numbers = #tpu.dot_dimension_numbers<[1], [1], [0], [0], [0, 0, 1, 0], [], []>} : vector<1x128xf32>, vector<128x128xf32>, vector<1x128xf32> -> vector<1x128xf32>
    %c0_9 = arith.constant 0 : index
    %c0_10 = arith.constant 0 : index
    %17 = vector.load %arg5[%c0_9, %c0_10] : memref<1x128xf32, #tpu.memory_space<vmem>>, vector<1x128xf32>
    tpu.vector_store %arg5[%c0_9, %c0_10], %16 {strides = array<i32>} : memref<1x128xf32, #tpu.memory_space<vmem>>, vector<1x128xf32>,
    return
  }
  func.func @transform_0(%arg0: i32) -> (i32, i32) {
    %c0_i32 = arith.constant 0 : i32
    %c0_i32_0 = arith.constant 0 : i32
    return %arg0, %c0_i32 : i32, i32
  }
  func.func @transform_1(%arg0: i32) -> (i32, i32) {
    %c0_i32 = arith.constant 0 : i32
    %c0_i32_0 = arith.constant 0 : i32
    %c0_i32_1 = arith.constant 0 : i32
    return %c0_i32, %c0_i32_0 : i32, i32
  }
  func.func @transform_2(%arg0: i32) -> (i32, i32) {
    %c0_i32 = arith.constant 0 : i32
    %c0_i32_0 = arith.constant 0 : i32
    %c0_i32_1 = arith.constant 0 : i32
    return %c0_i32, %c0_i32_0 : i32, i32
  }
  func.func @transform_3(%arg0: i32) -> (i32, i32) {
    %c0_i32 = arith.constant 0 : i32
    %c0_i32_0 = arith.constant 0 : i32
    %c0_i32_1 = arith.constant 0 : i32
    return %c0_i32, %c0_i32_0 : i32, i32
  }
  func.func @transform_4(%arg0: i32) -> (i32, i32) {
    %c0_i32 = arith.constant 0 : i32
    %c0_i32_0 = arith.constant 0 : i32
    return %c0_i32, %arg0 : i32, i32
  }
}

</mosaic_0001>

<bundles_post_ra>
// kernel: tpu_custom_call.1
= control target key start
LH: loop header
LB: loop body
LE: loop exit
PB: predicated region body
PF: predicated region fallthrough
CT: control target
= control target key end

     0   :  { %9 = vsyncpa [#allocation3], 0  ;;  %s1216_s0 = inlined_call_operand.hbm [shape: f32[128,512], index: 0, kind: input, shape index: {}]   ;;  %s1217_s1 = inlined_call_operand.hbm [shape: f32[512,256], index: 1, kind: input, shape index: {}]   ;;  %s1218_s2 = inlined_call_operand.vmem [shape: f32[1,256], index: 2, kind: input, shape index: {}]   ;;  %s1219_s3 = inlined_call_operand.vmem [shape: f32[1,128], index: 3, kind: input, shape index: {}]   ;;  %s1220_s4 = inlined_call_operand.hbm [shape: f32[1,128], index: 4, kind: output, shape index: {}]  }
   0x1   :  { %10 = vsyncpa [#allocation6], 0 }
   0x2   :  { %11 = vsyncpa [#allocation4], 0  ;;  %s1027_s15 = smov [#allocation2]  }
   0x3   :  { %s17_s16 = sshll.u32 %s1027_s15, 4  ;;  %s18_s16 = int_to_ptr.vmem [resolvable:$true] %s17_s16 }
   0x4   :  { %s969_s17 = scalar_lea.vmem %s18_s16, 8192  ;;  %p974_p1 = scmp.lt.s32.totalorder %s18_s16, %s18_s16 }
   0x5   :  { %p970_p0 = scmp.ne.s32.totalorder %s18_s16, %s969_s17  ;;  %p975_p2 = scmp.lt.s32.totalorder %s969_s17, %s969_s17 }
   0x7   :  { %p976_p3 = por %p975_p2, %p974_p1 }
   0x9   :  { %p977_p4 = pnand %p976_p3, %p970_p0 }
   0xb   :  { %980 = shalt.err (!%p977_p4)
}
   0xc   :  { %s1028_s18 = smov 512   ;;  %s1029_s19 = smov 32  }
   0xd   :  { %23 = dma.hbm_to_vmem [thread:$0]  %s1216_s0, 8192, %s18_s16, [#allocation3], %s1028_s18, %s1028_s18, %s1029_s19  }
   0xe   :  { %s1030_s22 = smov [#allocation5]  }
   0xf   :  { %s29_s23 = sshll.u32 %s1030_s22, 4  ;;  %s30_s23 = int_to_ptr.vmem [resolvable:$true] %s29_s23 }
  0x10   :  { %s989_s24 = scalar_lea.vmem %s30_s23, 16384  ;;  %p994_p6 = scmp.lt.s32.totalorder %s30_s23, %s30_s23 }
  0x11   :  { %p990_p5 = scmp.ne.s32.totalorder %s30_s23, %s989_s24  ;;  %p995_p7 = scmp.lt.s32.totalorder %s989_s24, %s989_s24 }
  0x13   :  { %p996_p8 = por %p995_p7, %p994_p6 }
  0x15   :  { %p997_p9 = pnand %p996_p8, %p990_p5 }
  0x17   :  { %1000 = shalt.err (!%p997_p9)
}
  0x18   :  { %s1031_s25 = smov 256   ;;  %s1032_s26 = smov 16  }
  0x19   :  { %35 = dma.hbm_to_vmem [thread:$0]  %s1217_s1, 16384, %s30_s23, [#allocation6], %s1031_s25, %s1031_s25, %s1032_s26  }
  0x1a   :  { %1021 = dma.done.wait [#allocation3], 8192  }
  0x1b   :  { %1022 = vsyncadd [#allocation3], 4294959104 }
  0x1c   :  { %1023 = dma.done.wait [#allocation6], 16384  }
  0x1d   :  { %1024 = vsyncadd [#allocation6], 4294950912  ;;  %v141_v0 = vld [vmem:[#allocation5 + $0xf8] sm:$0xff]  ;;  %v140_v2 = vld [vmem:[#allocation5 + $0xf0] sm:$0xff]  ;;  %vm1034_vm0 = vmmov 0   ;;  %s1035_s30 = smov [#allocation7]  }
  0x1e   :  { %v205_v1 = vld [vmem:[#allocation5 + $0x2f8] sm:$0xff]  ;;  %250 = vmatprep.subr.mxu0 %v141_v0  ;;  %v204_v3 = vld [vmem:[#allocation5 + $0x2f0] sm:$0xff]  ;;  %v139_v4 = vld [vmem:[#allocation5 + $0xe8] sm:$0xff]  ;;  %s778_s5 = sshll.u32 %s1035_s30, 4  ;;  %s779_s5 = int_to_ptr.vmem [resolvable:$true] %s778_s5 }
  0x1f   :  { %411 = vmatprep.subr.mxu1 %v205_v1  ;;  %v203_v5 = vld [vmem:[#allocation5 + $0x2e8] sm:$0xff]  ;;  %251 = vmatpush1.msra.mxu0 %v140_v2  ;;  %v138_v6 = vld [vmem:[#allocation5 + $0xe0] sm:$0xff]  ;;  %v137_v8 = vld [vmem:[#allocation5 + $0xd8] sm:$0xff]  ;;  %s1001_s6 = scalar_lea.vmem %s779_s5, 16  ;;  %s1005_s7 = scalar_lea.vmem %s779_s5, 32 }
  0x20   :  { %412 = vmatpush1.msra.mxu1 %v204_v3  ;;  %v202_v7 = vld [vmem:[#allocation5 + $0x2e0] sm:$0xff]  ;;  %252 = vmatprep.subr.mxu0 %v139_v4  ;;  %v201_v9 = vld [vmem:[#allocation5 + $0x2d8] sm:$0xff]  ;;  %v136_v10 = vld [vmem:[#allocation5 + $0xd0] sm:$0xff]  ;;  %p1002_p10 = scmp.ne.s32.totalorder %s779_s5, %s1001_s6  ;;  %p1006_p11 = scmp.lt.s32.totalorder %s779_s5, %s779_s5 }
  0x21   :  { %413 = vmatprep.subr.mxu1 %v203_v5  ;;  %v200_v11 = vld [vmem:[#allocation5 + $0x2d0] sm:$0xff]  ;;  %253 = vmatpush1.msra.mxu0 %v138_v6  ;;  %v135_v12 = vld [vmem:[#allocation5 + $0xc8] sm:$0xff]  ;;  %v134_v14 = vld [vmem:[#allocation5 + $0xc0] sm:$0xff]  ;;  %p1007_p12 = scmp.lt.s32.totalorder %s1005_s7, %s1001_s6 }
  0x22   :  { %414 = vmatpush1.msra.mxu1 %v202_v7  ;;  %v199_v13 = vld [vmem:[#allocation5 + $0x2c8] sm:$0xff]  ;;  %254 = vmatprep.subr.mxu0 %v137_v8  ;;  %v198_v15 = vld [vmem:[#allocation5 + $0x2c0] sm:$0xff]  ;;  %v133_v16 = vld [vmem:[#allocation5 + $0xb8] sm:$0xff] }
  0x23   :  { %415 = vmatprep.subr.mxu1 %v201_v9  ;;  %255 = vmatpush1.msra.mxu0 %v136_v10  ;;  %v197_v17 = vld [vmem:[#allocation5 + $0x2b8] sm:$0xff]  ;;  %v132_v18 = vld [vmem:[#allocation5 + $0xb0] sm:$0xff]  ;;  %v131_v20 = vld [vmem:[#allocation5 + $0xa8] sm:$0xff]  ;;  %p1008_p13 = por %p1007_p12, %p1006_p11 }
  0x24   :  { %416 = vmatpush1.msra.mxu1 %v200_v11  ;;  %256 = vmatprep.subr.mxu0 %v135_v12  ;;  %v196_v19 = vld [vmem:[#allocation5 + $0x2b0] sm:$0xff]  ;;  %v195_v21 = vld [vmem:[#allocation5 + $0x2a8] sm:$0xff]  ;;  %v130_v22 = vld [vmem:[#allocation5 + $0xa0] sm:$0xff] }
  0x25   :  { %417 = vmatprep.subr.mxu1 %v199_v13  ;;  %257 = vmatpush1.msra.mxu0 %v134_v14  ;;  %v194_v23 = vld [vmem:[#allocation5 + $0x2a0] sm:$0xff]  ;;  %v129_v24 = vld [vmem:[#allocation5 + $0x98] sm:$0xff]  ;;  %v128_v26 = vld [vmem:[#allocation5 + $0x90] sm:$0xff]  ;;  %p1009_p0 = pnand %p1008_p13, %p1002_p10 }
  0x26   :  { %418 = vmatpush1.msra.mxu1 %v198_v15  ;;  %258 = vmatprep.subr.mxu0 %v133_v16  ;;  %v193_v25 = vld [vmem:[#allocation5 + $0x298] sm:$0xff]  ;;  %v192_v27 = vld [vmem:[#allocation5 + $0x290] sm:$0xff]  ;;  %v127_v28 = vld [vmem:[#allocation5 + $0x88] sm:$0xff] }
  0x27   :  { %419 = vmatprep.subr.mxu1 %v197_v17  ;;  %259 = vmatpush1.msra.mxu0 %v132_v18  ;;  %v191_v29 = vld [vmem:[#allocation5 + $0x288] sm:$0xff]  ;;  %v126_v30 = vld [vmem:[#allocation5 + $0x80] sm:$0xff]  ;;  %v125_v32 = vld [vmem:[#allocation5 + $0x78] sm:$0xff] }
  0x28   :  { %420 = vmatpush1.msra.mxu1 %v196_v19  ;;  %260 = vmatprep.subr.mxu0 %v131_v20  ;;  %v190_v31 = vld [vmem:[#allocation5 + $0x280] sm:$0xff]  ;;  %v189_v33 = vld [vmem:[#allocation5 + $0x278] sm:$0xff]  ;;  %v124_v34 = vld [vmem:[#allocation5 + $0x70] sm:$0xff] }
  0x29   :  { %421 = vmatprep.subr.mxu1 %v195_v21  ;;  %261 = vmatpush1.msra.mxu0 %v130_v22  ;;  %v188_v35 = vld [vmem:[#allocation5 + $0x270] sm:$0xff]  ;;  %v123_v36 = vld [vmem:[#allocation5 + $0x68] sm:$0xff]  ;;  %v122_v38 = vld [vmem:[#allocation5 + $0x60] sm:$0xff] }
  0x2a   :  { %422 = vmatpush1.msra.mxu1 %v194_v23  ;;  %262 = vmatprep.subr.mxu0 %v129_v24  ;;  %v187_v37 = vld [vmem:[#allocation5 + $0x268] sm:$0xff]  ;;  %v186_v39 = vld [vmem:[#allocation5 + $0x260] sm:$0xff]  ;;  %v121_v40 = vld [vmem:[#allocation5 + $0x58] sm:$0xff] }
  0x2b   :  { %423 = vmatprep.subr.mxu1 %v193_v25  ;;  %263 = vmatpush1.msra.mxu0 %v128_v26  ;;  %v185_v41 = vld [vmem:[#allocation5 + $0x258] sm:$0xff]  ;;  %v120_v42 = vld [vmem:[#allocation5 + $0x50] sm:$0xff]  ;;  %v119_v44 = vld [vmem:[#allocation5 + $0x48] sm:$0xff] }
  0x2c   :  { %424 = vmatpush1.msra.mxu1 %v192_v27  ;;  %264 = vmatprep.subr.mxu0 %v127_v28  ;;  %v184_v43 = vld [vmem:[#allocation5 + $0x250] sm:$0xff]  ;;  %v183_v45 = vld [vmem:[#allocation5 + $0x248] sm:$0xff]  ;;  %v118_v46 = vld [vmem:[#allocation5 + $0x40] sm:$0xff] }
  0x2d   :  { %425 = vmatprep.subr.mxu1 %v191_v29  ;;  %265 = vmatpush1.msra.mxu0 %v126_v30  ;;  %v182_v47 = vld [vmem:[#allocation5 + $0x240] sm:$0xff]  ;;  %v117_v48 = vld [vmem:[#allocation5 + $0x38] sm:$0xff]  ;;  %v116_v50 = vld [vmem:[#allocation5 + $0x30] sm:$0xff] }
  0x2e   :  { %426 = vmatpush1.msra.mxu1 %v190_v31  ;;  %266 = vmatprep.subr.mxu0 %v125_v32  ;;  %v181_v49 = vld [vmem:[#allocation5 + $0x238] sm:$0xff]  ;;  %v180_v51 = vld [vmem:[#allocation5 + $0x230] sm:$0xff]  ;;  %v115_v52 = vld [vmem:[#allocation5 + $0x28] sm:$0xff] }
  0x2f   :  { %427 = vmatprep.subr.mxu1 %v189_v33  ;;  %267 = vmatpush1.msra.mxu0 %v124_v34  ;;  %v179_v53 = vld [vmem:[#allocation5 + $0x228] sm:$0xff]  ;;  %v114_v54 = vld [vmem:[#allocation5 + $0x20] sm:$0xff]  ;;  %v113_v56 = vld [vmem:[#allocation5 + $0x18] sm:$0xff] }
  0x30   :  { %428 = vmatpush1.msra.mxu1 %v188_v35  ;;  %268 = vmatprep.subr.mxu0 %v123_v36  ;;  %v178_v55 = vld [vmem:[#allocation5 + $0x220] sm:$0xff]  ;;  %v177_v57 = vld [vmem:[#allocation5 + $0x218] sm:$0xff]  ;;  %v112_v58 = vld [vmem:[#allocation5 + $0x10] sm:$0xff] }
  0x31   :  { %429 = vmatprep.subr.mxu1 %v187_v37  ;;  %269 = vmatpush1.msra.mxu0 %v122_v38  ;;  %v176_v59 = vld [vmem:[#allocation5 + $0x210] sm:$0xff]  ;;  %v111_v60 = vld [vmem:[#allocation5 + $0x8] sm:$0xff]  ;;  %v110_v62 = vld [vmem:[#allocation5] sm:$0xff] }
  0x32   :  { %430 = vmatpush1.msra.mxu1 %v186_v39  ;;  %270 = vmatprep.subr.mxu0 %v121_v40  ;;  %v175_v61 = vld [vmem:[#allocation5 + $0x208] sm:$0xff]  ;;  %v174_v63 = vld [vmem:[#allocation5 + $0x200] sm:$0xff]  ;;  %v173_v0 = vld [vmem:[#allocation5 + $0x1f8] sm:$0xff] }
  0x33   :  { %431 = vmatprep.subr.mxu1 %v185_v41  ;;  %271 = vmatpush1.msra.mxu0 %v120_v42  ;;  %v237_v1 = vld [vmem:[#allocation5 + $0x3f8] sm:$0xff]  ;;  %v172_v2 = vld [vmem:[#allocation5 + $0x1f0] sm:$0xff]  ;;  %v171_v4 = vld [vmem:[#allocation5 + $0x1e8] sm:$0xff] }
  0x34   :  { %432 = vmatpush1.msra.mxu1 %v184_v43  ;;  %272 = vmatprep.subr.mxu0 %v119_v44  ;;  %v236_v3 = vld [vmem:[#allocation5 + $0x3f0] sm:$0xff]  ;;  %v235_v5 = vld [vmem:[#allocation5 + $0x3e8] sm:$0xff]  ;;  %v170_v6 = vld [vmem:[#allocation5 + $0x1e0] sm:$0xff] }
  0x35   :  { %433 = vmatprep.subr.mxu1 %v183_v45  ;;  %273 = vmatpush1.msra.mxu0 %v118_v46  ;;  %v234_v7 = vld [vmem:[#allocation5 + $0x3e0] sm:$0xff]  ;;  %v169_v8 = vld [vmem:[#allocation5 + $0x1d8] sm:$0xff]  ;;  %v168_v10 = vld [vmem:[#allocation5 + $0x1d0] sm:$0xff] }
  0x36   :  { %434 = vmatpush1.msra.mxu1 %v182_v47  ;;  %274 = vmatprep.subr.mxu0 %v117_v48  ;;  %v233_v9 = vld [vmem:[#allocation5 + $0x3d8] sm:$0xff]  ;;  %v232_v11 = vld [vmem:[#allocation5 + $0x3d0] sm:$0xff]  ;;  %v167_v12 = vld [vmem:[#allocation5 + $0x1c8] sm:$0xff] }
  0x37   :  { %435 = vmatprep.subr.mxu1 %v181_v49  ;;  %275 = vmatpush1.msra.mxu0 %v116_v50  ;;  %v231_v13 = vld [vmem:[#allocation5 + $0x3c8] sm:$0xff]  ;;  %v166_v14 = vld [vmem:[#allocation5 + $0x1c0] sm:$0xff]  ;;  %v165_v16 = vld [vmem:[#allocation5 + $0x1b8] sm:$0xff] }
  0x38   :  { %436 = vmatpush1.msra.mxu1 %v180_v51  ;;  %276 = vmatprep.subr.mxu0 %v115_v52  ;;  %v230_v15 = vld [vmem:[#allocation5 + $0x3c0] sm:$0xff]  ;;  %v229_v17 = vld [vmem:[#allocation5 + $0x3b8] sm:$0xff]  ;;  %v164_v18 = vld [vmem:[#allocation5 + $0x1b0] sm:$0xff] }
  0x39   :  { %437 = vmatprep.subr.mxu1 %v179_v53  ;;  %277 = vmatpush1.msra.mxu0 %v114_v54  ;;  %v228_v19 = vld [vmem:[#allocation5 + $0x3b0] sm:$0xff]  ;;  %v163_v20 = vld [vmem:[#allocation5 + $0x1a8] sm:$0xff]  ;;  %v162_v22 = vld [vmem:[#allocation5 + $0x1a0] sm:$0xff] }
  0x3a   :  { %438 = vmatpush1.msra.mxu1 %v178_v55  ;;  %278 = vmatprep.subr.mxu0 %v113_v56  ;;  %v227_v21 = vld [vmem:[#allocation5 + $0x3a8] sm:$0xff]  ;;  %v226_v23 = vld [vmem:[#allocation5 + $0x3a0] sm:$0xff]  ;;  %v161_v24 = vld [vmem:[#allocation5 + $0x198] sm:$0xff] }
  0x3b   :  { %439 = vmatprep.subr.mxu1 %v177_v57  ;;  %279 = vmatpush1.msra.mxu0 %v112_v58  ;;  %v225_v25 = vld [vmem:[#allocation5 + $0x398] sm:$0xff]  ;;  %v160_v26 = vld [vmem:[#allocation5 + $0x190] sm:$0xff]  ;;  %v159_v28 = vld [vmem:[#allocation5 + $0x188] sm:$0xff] }
  0x3c   :  { %440 = vmatpush1.msra.mxu1 %v176_v59  ;;  %280 = vmatprep.subr.mxu0 %v111_v60  ;;  %v224_v27 = vld [vmem:[#allocation5 + $0x390] sm:$0xff]  ;;  %v223_v29 = vld [vmem:[#allocation5 + $0x388] sm:$0xff]  ;;  %v158_v30 = vld [vmem:[#allocation5 + $0x180] sm:$0xff] }
  0x3d   :  { %441 = vmatprep.subr.mxu1 %v175_v61  ;;  %281 = vmatpush1.msra.mxu0 %v110_v62  ;;  %v222_v31 = vld [vmem:[#allocation5 + $0x380] sm:$0xff]  ;;  %v157_v32 = vld [vmem:[#allocation5 + $0x178] sm:$0xff]  ;;  %v156_v34 = vld [vmem:[#allocation5 + $0x170] sm:$0xff] }
  0x3e   :  { %442 = vmatpush1.msra.mxu1 %v174_v63  ;;  %282 = vmatprep.subr.mxu0 %v173_v0  ;;  %v221_v33 = vld [vmem:[#allocation5 + $0x378] sm:$0xff]  ;;  %v220_v35 = vld [vmem:[#allocation5 + $0x370] sm:$0xff]  ;;  %v155_v36 = vld [vmem:[#allocation5 + $0x168] sm:$0xff] }
  0x3f   :  { %443 = vmatprep.subr.mxu1 %v237_v1  ;;  %283 = vmatpush2.msra.mxu0 %v172_v2  ;;  %v219_v37 = vld [vmem:[#allocation5 + $0x368] sm:$0xff]  ;;  %v154_v38 = vld [vmem:[#allocation5 + $0x160] sm:$0xff]  ;;  %v153_v40 = vld [vmem:[#allocation5 + $0x158] sm:$0xff] }
  0x40   :  { %444 = vmatpush2.msra.mxu1 %v236_v3  ;;  %284 = vmatprep.subr.mxu0 %v171_v4  ;;  %v218_v39 = vld [vmem:[#allocation5 + $0x360] sm:$0xff]  ;;  %v217_v41 = vld [vmem:[#allocation5 + $0x358] sm:$0xff]  ;;  %v152_v42 = vld [vmem:[#allocation5 + $0x150] sm:$0xff] }
  0x41   :  { %445 = vmatprep.subr.mxu1 %v235_v5  ;;  %285 = vmatpush2.msra.mxu0 %v170_v6  ;;  %v216_v43 = vld [vmem:[#allocation5 + $0x350] sm:$0xff]  ;;  %v151_v44 = vld [vmem:[#allocation5 + $0x148] sm:$0xff]  ;;  %v150_v46 = vld [vmem:[#allocation5 + $0x140] sm:$0xff] }
  0x42   :  { %446 = vmatpush2.msra.mxu1 %v234_v7  ;;  %286 = vmatprep.subr.mxu0 %v169_v8  ;;  %v215_v45 = vld [vmem:[#allocation5 + $0x348] sm:$0xff]  ;;  %v214_v47 = vld [vmem:[#allocation5 + $0x340] sm:$0xff]  ;;  %v149_v48 = vld [vmem:[#allocation5 + $0x138] sm:$0xff] }
  0x43   :  { %447 = vmatprep.subr.mxu1 %v233_v9  ;;  %287 = vmatpush2.msra.mxu0 %v168_v10  ;;  %v213_v49 = vld [vmem:[#allocation5 + $0x338] sm:$0xff]  ;;  %v148_v50 = vld [vmem:[#allocation5 + $0x130] sm:$0xff]  ;;  %v147_v52 = vld [vmem:[#allocation5 + $0x128] sm:$0xff] }
  0x44   :  { %448 = vmatpush2.msra.mxu1 %v232_v11  ;;  %288 = vmatprep.subr.mxu0 %v167_v12  ;;  %v212_v51 = vld [vmem:[#allocation5 + $0x330] sm:$0xff]  ;;  %v211_v53 = vld [vmem:[#allocation5 + $0x328] sm:$0xff]  ;;  %v146_v54 = vld [vmem:[#allocation5 + $0x120] sm:$0xff] }
  0x45   :  { %449 = vmatprep.subr.mxu1 %v231_v13  ;;  %289 = vmatpush2.msra.mxu0 %v166_v14  ;;  %v210_v55 = vld [vmem:[#allocation5 + $0x320] sm:$0xff]  ;;  %v145_v56 = vld [vmem:[#allocation5 + $0x118] sm:$0xff]  ;;  %v144_v58 = vld [vmem:[#allocation5 + $0x110] sm:$0xff] }
  0x46   :  { %450 = vmatpush2.msra.mxu1 %v230_v15  ;;  %290 = vmatprep.subr.mxu0 %v165_v16  ;;  %v209_v57 = vld [vmem:[#allocation5 + $0x318] sm:$0xff]  ;;  %v208_v59 = vld [vmem:[#allocation5 + $0x310] sm:$0xff]  ;;  %v143_v60 = vld [vmem:[#allocation5 + $0x108] sm:$0xff] }
  0x47   :  { %451 = vmatprep.subr.mxu1 %v229_v17  ;;  %291 = vmatpush2.msra.mxu0 %v164_v18  ;;  %v207_v61 = vld [vmem:[#allocation5 + $0x308] sm:$0xff]  ;;  %v142_v62 = vld [vmem:[#allocation5 + $0x100] sm:$0xff]  ;;  %v49_v1 = vld [vmem:[#allocation2 + $0x18] sm:$0xff] }
  0x48   :  { %452 = vmatpush2.msra.mxu1 %v228_v19  ;;  %292 = vmatprep.subr.mxu0 %v163_v20  ;;  %v47_v63 = vld [vmem:[#allocation2 + $0x8] sm:$0xff]  ;;  %v206_v0 = vld [vmem:[#allocation5 + $0x300] sm:$0xff]  ;;  %v48_v3 = vld [vmem:[#allocation2 + $0x10] sm:$0xff] }
  0x49   :  { %453 = vmatprep.subr.mxu1 %v227_v21  ;;  %293 = vmatpush2.msra.mxu0 %v162_v22  ;;  %v46_v2 = vld [vmem:[#allocation2] sm:$0xff]  ;;  %v51_v4 = vld [vmem:[#allocation2 + $0x28] sm:$0xff]  ;;  %v53_v5 = vld [vmem:[#allocation2 + $0x38] sm:$0xff] }
  0x4a   :  { %454 = vmatpush2.msra.mxu1 %v226_v23  ;;  %294 = vmatprep.subr.mxu0 %v161_v24  ;;  %v50_v6 = vld [vmem:[#allocation2 + $0x20] sm:$0xff]  ;;  %v52_v7 = vld [vmem:[#allocation2 + $0x30] sm:$0xff]  ;;  %v55_v8 = vld [vmem:[#allocation2 + $0x48] sm:$0xff] }
  0x4b   :  { %455 = vmatprep.subr.mxu1 %v225_v25  ;;  %295 = vmatpush2.msra.mxu0 %v160_v26  ;;  %v57_v9 = vld [vmem:[#allocation2 + $0x58] sm:$0xff]  ;;  %v54_v10 = vld [vmem:[#allocation2 + $0x40] sm:$0xff]  ;;  %v56_v11 = vld [vmem:[#allocation2 + $0x50] sm:$0xff] }
  0x4c   :  { %456 = vmatpush2.msra.mxu1 %v224_v27  ;;  %296 = vmatprep.subr.mxu0 %v159_v28  ;;  %v59_v12 = vld [vmem:[#allocation2 + $0x68] sm:$0xff]  ;;  %v61_v13 = vld [vmem:[#allocation2 + $0x78] sm:$0xff]  ;;  %v58_v14 = vld [vmem:[#allocation2 + $0x60] sm:$0xff] }
  0x4d   :  { %457 = vmatprep.subr.mxu1 %v223_v29  ;;  %297 = vmatpush2.msra.mxu0 %v158_v30  ;;  %v60_v15 = vld [vmem:[#allocation2 + $0x70] sm:$0xff]  ;;  %v63_v16 = vld [vmem:[#allocation2 + $0x88] sm:$0xff]  ;;  %v65_v17 = vld [vmem:[#allocation2 + $0x98] sm:$0xff] }
  0x4e   :  { %458 = vmatpush2.msra.mxu1 %v222_v31  ;;  %298 = vmatprep.subr.mxu0 %v157_v32  ;;  %v62_v18 = vld [vmem:[#allocation2 + $0x80] sm:$0xff]  ;;  %v64_v19 = vld [vmem:[#allocation2 + $0x90] sm:$0xff]  ;;  %v67_v20 = vld [vmem:[#allocation2 + $0xa8] sm:$0xff] }
  0x4f   :  { %459 = vmatprep.subr.mxu1 %v221_v33  ;;  %299 = vmatpush2.msra.mxu0 %v156_v34  ;;  %v69_v21 = vld [vmem:[#allocation2 + $0xb8] sm:$0xff]  ;;  %v66_v22 = vld [vmem:[#allocation2 + $0xa0] sm:$0xff]  ;;  %v68_v23 = vld [vmem:[#allocation2 + $0xb0] sm:$0xff] }
  0x50   :  { %460 = vmatpush2.msra.mxu1 %v220_v35  ;;  %300 = vmatprep.subr.mxu0 %v155_v36  ;;  %v71_v24 = vld [vmem:[#allocation2 + $0xc8] sm:$0xff]  ;;  %v73_v25 = vld [vmem:[#allocation2 + $0xd8] sm:$0xff]  ;;  %v70_v26 = vld [vmem:[#allocation2 + $0xc0] sm:$0xff] }
  0x51   :  { %461 = vmatprep.subr.mxu1 %v219_v37  ;;  %301 = vmatpush2.msra.mxu0 %v154_v38  ;;  %v72_v27 = vld [vmem:[#allocation2 + $0xd0] sm:$0xff]  ;;  %v75_v28 = vld [vmem:[#allocation2 + $0xe8] sm:$0xff]  ;;  %v77_v29 = vld [vmem:[#allocation2 + $0xf8] sm:$0xff] }
  0x52   :  { %462 = vmatpush2.msra.mxu1 %v218_v39  ;;  %302 = vmatprep.subr.mxu0 %v153_v40  ;;  %v74_v30 = vld [vmem:[#allocation2 + $0xe0] sm:$0xff]  ;;  %v76_v31 = vld [vmem:[#allocation2 + $0xf0] sm:$0xff]  ;;  %v79_v32 = vld [vmem:[#allocation2 + $0x108] sm:$0xff] }
  0x53   :  { %463 = vmatprep.subr.mxu1 %v217_v41  ;;  %303 = vmatpush2.msra.mxu0 %v152_v42  ;;  %v81_v33 = vld [vmem:[#allocation2 + $0x118] sm:$0xff]  ;;  %v78_v34 = vld [vmem:[#allocation2 + $0x100] sm:$0xff]  ;;  %v80_v35 = vld [vmem:[#allocation2 + $0x110] sm:$0xff] }
  0x54   :  { %464 = vmatpush2.msra.mxu1 %v216_v43  ;;  %304 = vmatprep.subr.mxu0 %v151_v44  ;;  %v83_v36 = vld [vmem:[#allocation2 + $0x128] sm:$0xff]  ;;  %v85_v37 = vld [vmem:[#allocation2 + $0x138] sm:$0xff]  ;;  %v82_v38 = vld [vmem:[#allocation2 + $0x120] sm:$0xff] }
  0x55   :  { %465 = vmatprep.subr.mxu1 %v215_v45  ;;  %305 = vmatpush2.msra.mxu0 %v150_v46  ;;  %v84_v39 = vld [vmem:[#allocation2 + $0x130] sm:$0xff]  ;;  %v87_v40 = vld [vmem:[#allocation2 + $0x148] sm:$0xff]  ;;  %v89_v41 = vld [vmem:[#allocation2 + $0x158] sm:$0xff] }
  0x56   :  { %466 = vmatpush2.msra.mxu1 %v214_v47  ;;  %306 = vmatprep.subr.mxu0 %v149_v48  ;;  %v86_v42 = vld [vmem:[#allocation2 + $0x140] sm:$0xff]  ;;  %v88_v43 = vld [vmem:[#allocation2 + $0x150] sm:$0xff]  ;;  %v91_v44 = vld [vmem:[#allocation2 + $0x168] sm:$0xff] }
  0x57   :  { %467 = vmatprep.subr.mxu1 %v213_v49  ;;  %307 = vmatpush2.msra.mxu0 %v148_v50  ;;  %v93_v45 = vld [vmem:[#allocation2 + $0x178] sm:$0xff]  ;;  %v90_v46 = vld [vmem:[#allocation2 + $0x160] sm:$0xff]  ;;  %v92_v47 = vld [vmem:[#allocation2 + $0x170] sm:$0xff] }
  0x58   :  { %468 = vmatpush2.msra.mxu1 %v212_v51  ;;  %308 = vmatprep.subr.mxu0 %v147_v52  ;;  %v95_v48 = vld [vmem:[#allocation2 + $0x188] sm:$0xff]  ;;  %v97_v49 = vld [vmem:[#allocation2 + $0x198] sm:$0xff]  ;;  %v94_v50 = vld [vmem:[#allocation2 + $0x180] sm:$0xff] }
  0x59   :  { %469 = vmatprep.subr.mxu1 %v211_v53  ;;  %309 = vmatpush2.msra.mxu0 %v146_v54  ;;  %v96_v51 = vld [vmem:[#allocation2 + $0x190] sm:$0xff]  ;;  %v99_v52 = vld [vmem:[#allocation2 + $0x1a8] sm:$0xff]  ;;  %v101_v53 = vld [vmem:[#allocation2 + $0x1b8] sm:$0xff] }
  0x5a   :  { %470 = vmatpush2.msra.mxu1 %v210_v55  ;;  %310 = vmatprep.subr.mxu0 %v145_v56  ;;  %v98_v54 = vld [vmem:[#allocation2 + $0x1a0] sm:$0xff]  ;;  %v100_v55 = vld [vmem:[#allocation2 + $0x1b0] sm:$0xff]  ;;  %v103_v56 = vld [vmem:[#allocation2 + $0x1c8] sm:$0xff] }
  0x5b   :  { %471 = vmatprep.subr.mxu1 %v209_v57  ;;  %311 = vmatpush2.msra.mxu0 %v144_v58  ;;  %v105_v57 = vld [vmem:[#allocation2 + $0x1d8] sm:$0xff]  ;;  %v102_v58 = vld [vmem:[#allocation2 + $0x1c0] sm:$0xff] }
  0x5c   :  { %472 = vmatpush2.msra.mxu1 %v208_v59  ;;  %312 = vmatprep.subr.mxu0 %v143_v60  ;;  %v104_v59 = vld [vmem:[#allocation2 + $0x1d0] sm:$0xff]  ;;  %v107_v60 = vld [vmem:[#allocation2 + $0x1e8] sm:$0xff] }
  0x5d   :  { %473 = vmatprep.subr.mxu1 %v207_v61  ;;  %313 = vmatpush2.msra.mxu0 %v142_v62  ;;  %v109_v61 = vld [vmem:[#allocation2 + $0x1f8] sm:$0xff]  ;;  %v106_v62 = vld [vmem:[#allocation2 + $0x1e0] sm:$0xff] }
  0x5e   :  { %314 = vmatprep.mubr.f32.mxu0 %v47_v63  ;;  %474 = vmatpush2.msra.mxu1 %v206_v0  ;;  %v108_v63 = vld [vmem:[#allocation2 + $0x1f0] sm:$0xff]  ;;  %v1033_v0 = vmov 0.0  }
  0x5f   :  { %475 = vmatprep.mubr.f32.mxu1 %v49_v1  ;;  %315 = vmatmul.mubr.f32.vlgmr.msra.gmra.mxu0 %v46_v2  ;;  %v240_v1 = vlaneseq }
  0x60   :  { %476 = vmatmul.mubr.f32.vlgmr.msra.gmra.mxu1 %v48_v3  ;;  %320 = vmatprep.mubr.f32.mxu0 %v51_v4  ;;  %v238_v4 = vld [vmem:[%s1218_s2] sm:$0x3] }
  0x61   :  { %481 = vmatprep.mubr.f32.mxu1 %v53_v5  ;;  %821 = vmatprep.subr.mxu0 %v1033_v0  ;;  %v241_v2 = vshrl.u32 %v240_v1, 7 }
  0x63   :  { %321 = vmatmul.mubr.f32.gmra.mxu0 %v50_v6  ;;  %v242_v3 = vsub.s32 0, %v241_v2  ;;  %v246_v5 = vsub.s32 1, %v241_v2 }
  0x64   :  { %482 = vmatmul.mubr.f32.gmra.mxu1 %v52_v7  ;;  %326 = vmatprep.mubr.f32.mxu0 %v55_v8 }
  0x65   :  { %487 = vmatprep.mubr.f32.mxu1 %v57_v9  ;;  %v1071_v6 = vrot.slane %v238_v4, %v242_v3  ;;  %v1073_v7 = vrot.slane %v238_v4, %v246_v5 }
  0x67   :  { %327 = vmatmul.mubr.f32.gmra.mxu0 %v54_v10 }
  0x68   :  { %488 = vmatmul.mubr.f32.gmra.mxu1 %v56_v11  ;;  %332 = vmatprep.mubr.f32.mxu0 %v59_v12 }
  0x69   :  { %493 = vmatprep.mubr.f32.mxu1 %v61_v13 }
  0x6b   :  { %333 = vmatmul.mubr.f32.gmra.mxu0 %v58_v14 }
  0x6c   :  { %494 = vmatmul.mubr.f32.gmra.mxu1 %v60_v15  ;;  %338 = vmatprep.mubr.f32.mxu0 %v63_v16 }
  0x6d   :  { %499 = vmatprep.mubr.f32.mxu1 %v65_v17 }
  0x6f   :  { %339 = vmatmul.mubr.f32.gmra.mxu0 %v62_v18 }
  0x70   :  { %500 = vmatmul.mubr.f32.gmra.mxu1 %v64_v19  ;;  %344 = vmatprep.mubr.f32.mxu0 %v67_v20 }
  0x71   :  { %505 = vmatprep.mubr.f32.mxu1 %v69_v21 }
  0x73   :  { %345 = vmatmul.mubr.f32.gmra.mxu0 %v66_v22 }
  0x74   :  { %506 = vmatmul.mubr.f32.gmra.mxu1 %v68_v23  ;;  %350 = vmatprep.mubr.f32.mxu0 %v71_v24 }
  0x75   :  { %511 = vmatprep.mubr.f32.mxu1 %v73_v25 }
  0x77   :  { %351 = vmatmul.mubr.f32.gmra.mxu0 %v70_v26 }
  0x78   :  { %512 = vmatmul.mubr.f32.gmra.mxu1 %v72_v27  ;;  %356 = vmatprep.mubr.f32.mxu0 %v75_v28 }
  0x79   :  { %517 = vmatprep.mubr.f32.mxu1 %v77_v29 }
  0x7b   :  { %357 = vmatmul.mubr.f32.gmra.mxu0 %v74_v30 }
  0x7c   :  { %518 = vmatmul.mubr.f32.gmra.mxu1 %v76_v31  ;;  %362 = vmatprep.mubr.f32.mxu0 %v79_v32 }
  0x7d   :  { %523 = vmatprep.mubr.f32.mxu1 %v81_v33 }
  0x7f   :  { %363 = vmatmul.mubr.f32.gmra.mxu0 %v78_v34 }
  0x80   :  { %524 = vmatmul.mubr.f32.gmra.mxu1 %v80_v35  ;;  %368 = vmatprep.mubr.f32.mxu0 %v83_v36 }
  0x81   :  { %529 = vmatprep.mubr.f32.mxu1 %v85_v37 }
  0x83   :  { %369 = vmatmul.mubr.f32.gmra.mxu0 %v82_v38 }
  0x84   :  { %530 = vmatmul.mubr.f32.gmra.mxu1 %v84_v39  ;;  %374 = vmatprep.mubr.f32.mxu0 %v87_v40 }
  0x85   :  { %535 = vmatprep.mubr.f32.mxu1 %v89_v41 }
  0x87   :  { %375 = vmatmul.mubr.f32.gmra.mxu0 %v86_v42 }
  0x88   :  { %536 = vmatmul.mubr.f32.gmra.mxu1 %v88_v43  ;;  %380 = vmatprep.mubr.f32.mxu0 %v91_v44 }
  0x89   :  { %541 = vmatprep.mubr.f32.mxu1 %v93_v45 }
  0x8b   :  { %381 = vmatmul.mubr.f32.gmra.mxu0 %v90_v46 }
  0x8c   :  { %542 = vmatmul.mubr.f32.gmra.mxu1 %v92_v47  ;;  %386 = vmatprep.mubr.f32.mxu0 %v95_v48 }
  0x8d   :  { %547 = vmatprep.mubr.f32.mxu1 %v97_v49 }
  0x8f   :  { %387 = vmatmul.mubr.f32.gmra.mxu0 %v94_v50 }
  0x90   :  { %548 = vmatmul.mubr.f32.gmra.mxu1 %v96_v51  ;;  %392 = vmatprep.mubr.f32.mxu0 %v99_v52 }
  0x91   :  { %553 = vmatprep.mubr.f32.mxu1 %v101_v53 }
  0x93   :  { %393 = vmatmul.mubr.f32.gmra.mxu0 %v98_v54 }
  0x94   :  { %554 = vmatmul.mubr.f32.gmra.mxu1 %v100_v55  ;;  %398 = vmatprep.mubr.f32.mxu0 %v103_v56 }
  0x95   :  { %559 = vmatprep.mubr.f32.mxu1 %v105_v57 }
  0x97   :  { %399 = vmatmul.mubr.f32.gmra.mxu0 %v102_v58 }
  0x98   :  { %560 = vmatmul.mubr.f32.gmra.mxu1 %v104_v59  ;;  %404 = vmatprep.mubr.f32.mxu0 %v107_v60 }
  0x99   :  { %565 = vmatprep.mubr.f32.mxu1 %v109_v61 }
  0x9b   :  { %405 = vmatmul.mubr.f32.gmra.mxu0 %v106_v62 }
  0x9c   :  { %566 = vmatmul.mubr.f32.gmra.mxu1 %v108_v63  ;;  %853 = vmatprep.mubr.msk.f32.mxu0 %vm1034_vm0, %v1033_v0 }
 0x11f   :  { %v316_v8 = vpop.f32.mrf.mxu0 }
 0x120   :  { %v477_v9 = vpop.f32.mrf.mxu1  ;;  %v317_v10 = vadd.f32 %v316_v8, %v1071_v6 }
 0x121   :  { %v318_v11 = vpop.f32.mrf.mxu0 }
 0x122   :  { %v479_v12 = vpop.f32.mrf.mxu1  ;;  %v478_v13 = vadd.f32 %v477_v9, %v317_v10  ;;  %v319_v14 = vadd.f32 %v318_v11, %v1073_v7 }
 0x123   :  { %v322_v15 = vpop.f32.mrf.mxu0 }
 0x124   :  { %v483_v16 = vpop.f32.mrf.mxu1  ;;  %v480_v17 = vadd.f32 %v479_v12, %v319_v14  ;;  %v323_v18 = vadd.f32 %v322_v15, %v1071_v6 }
 0x125   :  { %v324_v19 = vpop.f32.mrf.mxu0 }
 0x126   :  { %v485_v20 = vpop.f32.mrf.mxu1  ;;  %v788_v21 = vmul.f32 -1.442695, %v480_v17  ;;  %v484_v22 = vadd.f32 %v483_v16, %v323_v18  ;;  %v325_v23 = vadd.f32 %v324_v19, %v1073_v7 }
 0x127   :  { %v328_v24 = vpop.f32.mrf.mxu0 }
 0x128   :  { %v489_v25 = vpop.f32.mrf.mxu1  ;;  %865 = vpow2.f32 %v788_v21  ;;  %v486_v26 = vadd.f32 %v485_v20, %v325_v23  ;;  %v329_v27 = vadd.f32 %v328_v24, %v1071_v6 }
 0x129   :  { %v330_v28 = vpop.f32.mrf.mxu0 }
 0x12a   :  { %v491_v29 = vpop.f32.mrf.mxu1  ;;  %v789_v30 = vmul.f32 -1.442695, %v486_v26  ;;  %v490_v31 = vadd.f32 %v489_v25, %v329_v27  ;;  %v331_v32 = vadd.f32 %v330_v28, %v1073_v7 }
 0x12b   :  { %v334_v33 = vpop.f32.mrf.mxu0 }
 0x12c   :  { %v495_v34 = vpop.f32.mrf.mxu1  ;;  %867 = vpow2.f32 %v789_v30  ;;  %v492_v35 = vadd.f32 %v491_v29, %v331_v32  ;;  %v335_v36 = vadd.f32 %v334_v33, %v1071_v6 }
 0x12d   :  { %v336_v37 = vpop.f32.mrf.mxu0 }
 0x12e   :  { %v497_v38 = vpop.f32.mrf.mxu1  ;;  %v790_v39 = vmul.f32 -1.442695, %v492_v35  ;;  %v1082_v40 = vadd.f32 %v495_v34, %v335_v36  ;;  %v337_v41 = vadd.f32 %v336_v37, %v1073_v7 }
 0x12f   :  { %v340_v42 = vpop.f32.mrf.mxu0 }
 0x130   :  { %v501_v43 = vpop.f32.mrf.mxu1  ;;  %869 = vpow2.f32 %v790_v39  ;;  %v498_v44 = vadd.f32 %v497_v38, %v337_v41  ;;  %v341_v45 = vadd.f32 %v340_v42, %v1071_v6 }
 0x131   :  { %v342_v46 = vpop.f32.mrf.mxu0 }
 0x132   :  { %v503_v47 = vpop.f32.mrf.mxu1  ;;  %v791_v48 = vmul.f32 -1.442695, %v498_v44  ;;  %v1086_v49 = vadd.f32 %v501_v43, %v341_v45  ;;  %v343_v50 = vadd.f32 %v342_v46, %v1073_v7 }
 0x133   :  { %v346_v51 = vpop.f32.mrf.mxu0 }
 0x134   :  { %v507_v52 = vpop.f32.mrf.mxu1  ;;  %871 = vpow2.f32 %v791_v48  ;;  %v504_v53 = vadd.f32 %v503_v47, %v343_v50  ;;  %v347_v54 = vadd.f32 %v346_v51, %v1071_v6 }
 0x135   :  { %v866_v55 = vpop.eup %865  ;;  %v348_v56 = vpop.f32.mrf.mxu0  ;;  %873 = vtanh.f32 %v478_v13 }
 0x136   :  { %v509_v57 = vpop.f32.mrf.mxu1  ;;  %v636_v58 = vadd.f32 1.0, %v866_v55  ;;  %v792_v59 = vmul.f32 -1.442695, %v504_v53  ;;  %v1090_v60 = vadd.f32 %v507_v52, %v347_v54  ;;  %v349_v61 = vadd.f32 %v348_v56, %v1073_v7 }
 0x137   :  { %v352_v62 = vpop.f32.mrf.mxu0 }
 0x138   :  { %v513_v63 = vpop.f32.mrf.mxu1  ;;  %875 = vrcp.f32 %v636_v58  ;;  %v510_v1 = vadd.f32 %v509_v57, %v349_v61  ;;  %v353_v2 = vadd.f32 %v352_v62, %v1071_v6 }
 0x139   :  { %v868_v3 = vpop.eup %867  ;;  %877 = vpow2.f32 %v792_v59  ;;  %v354_v4 = vpop.f32.mrf.mxu0 }
 0x13a   :  { %v515_v5 = vpop.f32.mrf.mxu1  ;;  %v637_v8 = vadd.f32 1.0, %v868_v3  ;;  %v793_v9 = vmul.f32 -1.442695, %v510_v1  ;;  %v1094_v10 = vadd.f32 %v513_v63, %v353_v2  ;;  %879 = vtanh.f32 %v484_v22 }
 0x13b   :  { %v355_v11 = vadd.f32 %v354_v4, %v1073_v7  ;;  %v358_v12 = vpop.f32.mrf.mxu0 }
 0x13c   :  { %v519_v14 = vpop.f32.mrf.mxu1  ;;  %881 = vrcp.f32 %v637_v8  ;;  %v359_v13 = vadd.f32 %v358_v12, %v1071_v6 }
 0x13d   :  { %v870_v15 = vpop.eup %869  ;;  %883 = vpow2.f32 %v793_v9  ;;  %v516_v16 = vadd.f32 %v515_v5, %v355_v11  ;;  %v360_v17 = vpop.f32.mrf.mxu0 }
 0x13e   :  { %v521_v18 = vpop.f32.mrf.mxu1  ;;  %v638_v19 = vadd.f32 1.0, %v870_v15  ;;  %v1098_v20 = vadd.f32 %v519_v14, %v359_v13  ;;  %v361_v21 = vadd.f32 %v360_v17, %v1073_v7  ;;  %885 = vtanh.f32 %v490_v31 }
 0x13f   :  { %v794_v23 = vmul.f32 -1.442695, %v516_v16  ;;  %v364_v22 = vpop.f32.mrf.mxu0 }
 0x140   :  { %v525_v24 = vpop.f32.mrf.mxu1  ;;  %887 = vrcp.f32 %v638_v19  ;;  %v522_v25 = vadd.f32 %v521_v18, %v361_v21  ;;  %v365_v26 = vadd.f32 %v364_v22, %v1071_v6 }
 0x141   :  { %v872_v27 = vpop.eup %871  ;;  %889 = vpow2.f32 %v794_v23  ;;  %v1102_v28 = vpop.f32.mrf.mxu0 }
 0x142   :  { %v1104_v29 = vpop.f32.mrf.mxu1  ;;  %v639_v30 = vadd.f32 1.0, %v872_v27  ;;  %v795_v32 = vmul.f32 -1.442695, %v522_v25  ;;  %v1106_v33 = vadd.f32 %v525_v24, %v365_v26  ;;  %891 = vtanh.f32 %v1082_v40  ;;  %v874_v35 = vpop.eup %873 }
 0x143   :  { %v370_v31 = vpop.f32.mrf.mxu0 }
 0x144   :  { %v531_v34 = vpop.f32.mrf.mxu1  ;;  %893 = vrcp.f32 %v639_v30  ;;  %v371_v36 = vadd.f32 %v370_v31, %v1071_v6 }
 0x145   :  { %v876_v37 = vpop.eup %875  ;;  %895 = vpow2.f32 %v795_v32  ;;  %v1111_v38 = vpop.f32.mrf.mxu0 }
 0x146   :  { %v1113_v39 = vpop.f32.mrf.mxu1  ;;  %v878_v41 = vpop.eup %877  ;;  %v1115_v42 = vadd.f32 %v531_v34, %v371_v36  ;;  %v1117_v43 = vmul.f32 %v876_v37, %v874_v35  ;;  %897 = vtanh.f32 %v1086_v49 }
 0x147   :  { %v640_v44 = vadd.f32 1.0, %v878_v41  ;;  %v1119_v45 = vpop.f32.mrf.mxu0  ;;  %v880_v46 = vpop.eup %879 }
 0x148   :  { %v1121_v40 = vpop.f32.mrf.mxu1 }
 0x149   :  { %v882_v47 = vpop.eup %881  ;;  %899 = vrcp.f32 %v640_v44  ;;  %v1124_v48 = vpop.f32.mrf.mxu0 }
 0x14a   :  { %v1126_v50 = vpop.f32.mrf.mxu1  ;;  %v884_v51 = vpop.eup %883  ;;  %v1132_v55 = vmul.f32 %v882_v47, %v880_v46  ;;  %901 = vtanh.f32 %v1090_v60 }
 0x14b   :  { %v641_v52 = vadd.f32 1.0, %v884_v51  ;;  %v1128_v53 = vpop.f32.mrf.mxu0  ;;  %v886_v56 = vpop.eup %885 }
 0x14c   :  { %v1130_v54 = vpop.f32.mrf.mxu1 }
 0x14d   :  { %v888_v57 = vpop.eup %887  ;;  %903 = vrcp.f32 %v641_v52  ;;  %v384_v49 = vpop.f32.mrf.mxu0 }
 0x14e   :  { %v545_v58 = vpop.f32.mrf.mxu1  ;;  %v890_v59 = vpop.eup %889  ;;  %v1139_v1 = vmul.f32 %v888_v57, %v886_v56  ;;  %905 = vtanh.f32 %v1094_v10  ;;  %v385_v56 = vadd.f32 %v384_v49, %v1073_v7 }
 0x14f   :  { %v642_v61 = vadd.f32 1.0, %v890_v59  ;;  %v1135_v62 = vpop.f32.mrf.mxu0  ;;  %v892_v2 = vpop.eup %891 }
 0x150   :  { %v1137_v63 = vpop.f32.mrf.mxu1 }
 0x151   :  { %v894_v3 = vpop.eup %893  ;;  %907 = vrcp.f32 %v642_v61  ;;  %v390_v4 = vpop.f32.mrf.mxu0 }
 0x152   :  { %v551_v5 = vpop.f32.mrf.mxu1  ;;  %v896_v60 = vpop.eup %895  ;;  %v1146_v12 = vmul.f32 %v894_v3, %v892_v2  ;;  %909 = vtanh.f32 %v1098_v20  ;;  %v391_v36 = vadd.f32 %v390_v4, %v1073_v7  ;;  %v379_v3 = vadd.f32 %v1124_v48, %v1073_v7 }
 0x153   :  { %v643_v8 = vadd.f32 1.0, %v896_v60  ;;  %v1142_v9 = vpop.f32.mrf.mxu0  ;;  %v898_v14 = vpop.eup %897  ;;  %v546_v4 = vadd.f32 %v545_v58, %v385_v56 }
 0x154   :  { %v1144_v11 = vpop.f32.mrf.mxu1  ;;  %v552_v59 = vadd.f32 %v551_v5, %v391_v36  ;;  %v367_v5 = vadd.f32 %v1102_v28, %v1073_v7 }
 0x155   :  { %911 = vrcp.f32 %v643_v8  ;;  %v396_v13 = vpop.f32.mrf.mxu0  ;;  %v373_v8 = vadd.f32 %v1111_v38, %v1073_v7 }
 0x156   :  { %v557_v15 = vpop.f32.mrf.mxu1  ;;  %v900_v16 = vpop.eup %899  ;;  %v397_v24 = vadd.f32 %v396_v13, %v1073_v7  ;;  %v800_v60 = vmul.f32 -1.442695, %v552_v59  ;;  %v799_v13 = vmul.f32 -1.442695, %v546_v4  ;;  %v528_v38 = vadd.f32 %v1104_v29, %v367_v5 }
 0x157   :  { %v400_v10 = vpop.f32.mrf.mxu0  ;;  %v1149_v18 = vmul.f32 %v900_v16, %v898_v14  ;;  %v902_v19 = vpop.eup %901  ;;  %v540_v14 = vadd.f32 %v1126_v50, %v379_v3 }
 0x158   :  { %v561_v17 = vpop.f32.mrf.mxu1  ;;  %v558_v37 = vadd.f32 %v557_v15, %v397_v24  ;;  %v534_v15 = vadd.f32 %v1113_v39, %v373_v8  ;;  %v796_v39 = vmul.f32 -1.442695, %v528_v38 }
 0x159   :  { %v402_v21 = vpop.f32.mrf.mxu0  ;;  %v798_v16 = vmul.f32 -1.442695, %v540_v14 }
 0x15a   :  { %v563_v23 = vpop.f32.mrf.mxu1  ;;  %v904_v22 = vpop.eup %903  ;;  %v403_v25 = vadd.f32 %v402_v21, %v1073_v7  ;;  %v801_v61 = vmul.f32 -1.442695, %v558_v37 }
 0x15b   :  { %v406_v26 = vpop.f32.mrf.mxu0  ;;  %v1153_v20 = vmul.f32 %v904_v22, %v902_v19  ;;  %v906_v30 = vpop.eup %905  ;;  %v401_v19 = vadd.f32 %v400_v10, %v1071_v6  ;;  %v389_v10 = vadd.f32 %v1135_v62, %v1071_v6  ;;  %v377_v62 = vadd.f32 %v1119_v45, %v1071_v6 }
 0x15c   :  { %v567_v27 = vpop.f32.mrf.mxu1  ;;  %v564_v32 = vadd.f32 %v563_v23, %v403_v25  ;;  %v407_v49 = vadd.f32 %v406_v26, %v1071_v6  ;;  %v797_v23 = vmul.f32 -1.442695, %v534_v15 }
 0x15d   :  { %v408_v31 = vpop.f32.mrf.mxu0  ;;  %v562_v28 = vadd.f32 %v561_v17, %v401_v19  ;;  %v550_v17 = vadd.f32 %v1137_v63, %v389_v10 }
 0x15e   :  { %v908_v34 = vpop.eup %907  ;;  %v409_v35 = vadd.f32 %v408_v31, %v1073_v7  ;;  %v802_v41 = vmul.f32 -1.442695, %v564_v32  ;;  %v569_v44 = vpop.f32.mrf.mxu1  ;;  %v568_v58 = vadd.f32 %v567_v27, %v407_v49  ;;  %v395_v7 = vadd.f32 %v1142_v9, %v1071_v6 }
 0x15f   :  { %v1157_v46 = vmul.f32 %v908_v34, %v906_v30  ;;  %v910_v51 = vpop.eup %909  ;;  %v383_v9 = vadd.f32 %v1128_v53, %v1071_v6  ;;  %v538_v53 = vadd.f32 %v1121_v40, %v377_v62 }
 0x160   :  { %v570_v47 = vadd.f32 %v569_v44, %v409_v35  ;;  %913 = vpow2.f32 %v802_v41  ;;  %v556_v29 = vadd.f32 %v1144_v11, %v395_v7 }
 0x161   :  { %v544_v11 = vadd.f32 %v1130_v54, %v383_v9 }
 0x162   :  { %v912_v52 = vpop.eup %911  ;;  %v803_v57 = vmul.f32 -1.442695, %v570_v47 }
 0x163   :  { %v1160_v2 = vmul.f32 %v912_v52, %v910_v51 }
 0x164   :  { %915 = vpow2.f32 %v803_v57 }
 0x165   :  { %917 = vpow2.f32 %v801_v61 }
 0x166   :  { %919 = vpow2.f32 %v800_v60 }
 0x167   :  { %921 = vpow2.f32 %v799_v13 }
 0x168   :  { %923 = vpow2.f32 %v798_v16 }
 0x169   :  { %925 = vtanh.f32 %v568_v58 }
 0x16d   :  { %v914_v48 = vpop.eup %913 }
 0x16e   :  { %v650_v50 = vadd.f32 1.0, %v914_v48 }
 0x171   :  { %v916_v21 = vpop.eup %915 }
 0x172   :  { %v651_v22 = vadd.f32 1.0, %v916_v21  ;;  %v918_v24 = vpop.eup %917 }
 0x173   :  { %v649_v25 = vadd.f32 1.0, %v918_v24  ;;  %v920_v26 = vpop.eup %919 }
 0x174   :  { %927 = vrcp.f32 %v651_v22  ;;  %v648_v27 = vadd.f32 1.0, %v920_v26  ;;  %v922_v30 = vpop.eup %921 }
 0x175   :  { %929 = vpow2.f32 %v797_v23  ;;  %v647_v32 = vadd.f32 1.0, %v922_v30  ;;  %v924_v31 = vpop.eup %923 }
 0x176   :  { %931 = vrcp.f32 %v650_v50  ;;  %v926_v34 = vpop.eup %925  ;;  %v646_v37 = vadd.f32 1.0, %v924_v31 }
 0x177   :  { %933 = vtanh.f32 %v562_v28 }
 0x178   :  { %935 = vpow2.f32 %v796_v39 }
 0x179   :  { %937 = vrcp.f32 %v649_v25 }
 0x17a   :  { %939 = vtanh.f32 %v556_v29 }
 0x17b   :  { %941 = vrcp.f32 %v648_v27 }
 0x17c   :  { %943 = vtanh.f32 %v550_v17 }
 0x17d   :  { %945 = vrcp.f32 %v647_v32 }
 0x17e   :  { %947 = vtanh.f32 %v544_v11 }
 0x17f   :  { %949 = vrcp.f32 %v646_v37 }
 0x180   :  { %951 = vtanh.f32 %v538_v53 }
 0x181   :  { %v928_v35 = vpop.eup %927 }
 0x182   :  { %v930_v36 = vpop.eup %929  ;;  %v699_v41 = vmul.f32 %v928_v35, %v926_v34 }
 0x183   :  { %v932_v44 = vpop.eup %931  ;;  %v645_v51 = vadd.f32 1.0, %v930_v36 }
 0x184   :  { %822 = vmatpush3.xpose.msra.mxu0 %v699_v41  ;;  %v934_v63 = vpop.eup %933 }
 0x185   :  { %823 = vmatprep.subr.mxu0 %v1033_v0  ;;  %v936_v47 = vpop.eup %935  ;;  %v698_v6 = vmul.f32 %v934_v63, %v932_v44  ;;  %953 = vrcp.f32 %v645_v51 }
 0x186   :  { %v938_v45 = vpop.eup %937  ;;  %v644_v52 = vadd.f32 1.0, %v936_v47  ;;  %955 = vtanh.f32 %v1115_v42 }
 0x187   :  { %v940_v54 = vpop.eup %939 }
 0x188   :  { %824 = vmatpush3.xpose.msra.mxu0 %v698_v6  ;;  %v697_v56 = vmul.f32 %v940_v54, %v938_v45  ;;  %v942_v57 = vpop.eup %941  ;;  %957 = vrcp.f32 %v644_v52 }
 0x189   :  { %825 = vmatprep.subr.mxu0 %v1033_v0  ;;  %v944_v40 = vpop.eup %943  ;;  %959 = vtanh.f32 %v1106_v33 }
 0x18a   :  { %v696_v59 = vmul.f32 %v944_v40, %v942_v57  ;;  %v946_v61 = vpop.eup %945 }
 0x18b   :  { %v948_v3 = vpop.eup %947 }
 0x18c   :  { %826 = vmatpush3.xpose.msra.mxu0 %v697_v56  ;;  %v695_v4 = vmul.f32 %v948_v3, %v946_v61  ;;  %v950_v60 = vpop.eup %949 }
 0x18d   :  { %827 = vmatprep.subr.mxu0 %v1033_v0  ;;  %v952_v8 = vpop.eup %951 }
 0x18e   :  { %v694_v42 = vmul.f32 %v952_v8, %v950_v60 }
 0x190   :  { %828 = vmatpush3.xpose.msra.mxu0 %v696_v59 }
 0x191   :  { %829 = vmatprep.subr.mxu0 %v1033_v0 }
 0x192   :  { %v954_v14 = vpop.eup %953 }
 0x193   :  { %v956_v13 = vpop.eup %955 }
 0x194   :  { %830 = vmatpush3.xpose.msra.mxu0 %v695_v4  ;;  %v693_v49 = vmul.f32 %v956_v13, %v954_v14 }
 0x195   :  { %831 = vmatprep.subr.mxu0 %v1033_v0  ;;  %v958_v5 = vpop.eup %957 }
 0x196   :  { %v960_v33 = vpop.eup %959 }
 0x197   :  { %v692_v15 = vmul.f32 %v960_v33, %v958_v5 }
 0x198   :  { %832 = vmatpush3.xpose.msra.mxu0 %v694_v42 }
 0x199   :  { %833 = vmatprep.subr.mxu0 %v1033_v0 }
 0x19c   :  { %834 = vmatpush3.xpose.msra.mxu0 %v693_v49 }
 0x19d   :  { %835 = vmatprep.subr.mxu0 %v1033_v0 }
 0x1a0   :  { %836 = vmatpush3.xpose.msra.mxu0 %v692_v15 }
 0x1a1   :  { %837 = vmatprep.subr.mxu0 %v1033_v0 }
 0x1a4   :  { %838 = vmatpush3.xpose.msra.mxu0 %v1160_v2 }
 0x1a5   :  { %839 = vmatprep.subr.mxu0 %v1033_v0 }
 0x1a8   :  { %840 = vmatpush3.xpose.msra.mxu0 %v1157_v46 }
 0x1a9   :  { %841 = vmatprep.subr.mxu0 %v1033_v0 }
 0x1ac   :  { %842 = vmatpush3.xpose.msra.mxu0 %v1153_v20 }
 0x1ad   :  { %843 = vmatprep.subr.mxu0 %v1033_v0 }
 0x1b0   :  { %844 = vmatpush3.xpose.msra.mxu0 %v1149_v18  ;;  %v700_v18 = vld [vmem:[%s1219_s3] sm:$0x1] }
 0x1b1   :  { %845 = vmatprep.subr.mxu0 %v1033_v0 }
 0x1b4   :  { %846 = vmatpush3.xpose.msra.mxu0 %v1146_v12 }
 0x1b5   :  { %847 = vmatprep.subr.mxu0 %v1033_v0 }
 0x1b8   :  { %848 = vmatpush3.xpose.msra.mxu0 %v1139_v1 }
 0x1b9   :  { %849 = vmatprep.subr.mxu0 %v1033_v0 }
 0x1bc   :  { %850 = vmatpush3.xpose.msra.mxu0 %v1132_v55 }
 0x1bd   :  { %851 = vmatprep.subr.mxu0 %v1033_v0 }
 0x1c0   :  { %852 = vmatpush3.xpose.msra.mxu0 %v1117_v43 }
 0x1c3   :  { %854 = vmatmul.mubr.f32.vlgmr.msra.gmra.mxu0 %v700_v18 }
 0x283   :  { %v767_v12 = vpop.f32.mrf.mxu0 }
 0x284   :  { %771 = vst [vmem:[#allocation7] sm:$0x1] %v767_v12 }
 0x285   :  { %v855_v20 = vpop.f32.mrf.mxu0 }
 0x286   :  { %1012 = shalt.err (!%p1009_p0)
}
 0x287   :  { %781 = dma.vmem_to_hbm [thread:$0]  %s779_s5, 16, %s1220_s4, [#allocation4]  }
 0x288   :  { %1025 = dma.done.wait [#allocation4], 16  }
 0x289   :  { %1026 = vsyncadd [#allocation4], 4294967280 }
 0x28a   :  { %785 = vsyncpa [#allocation3], 1 }
 0x28b   :  { %786 = vsyncpa [#allocation6], 1 }
 0x28c   :  { %787 = vsyncpa [#allocation4], 1 }

</bundles_post_ra>
